<compile_context>
chip_gen: v5e
topology: v5e:2x2
jax: 0.10.0
libtpu: 0.0.40
codegen_flags: <defaults>
</compile_context>

<pallas_src>
import jax
import jax.numpy as jnp
from jax.experimental import pallas as pl
from jax.experimental.pallas import tpu as pltpu

_LANE = 128
_SUBLANE = 8                               # native sublane count for 32-bit dtypes
_MAX_LANE_WIDTH = 4096                     # widest lane-dense slab we bother with
_TARGET_TILE_BYTES = 8 * 1024 * 1024       # per-buffer tile (2 in + 2 out bufs = 32 MiB)
_VMEM_LIMIT_BYTES = 48 * 1024 * 1024       # explicit scoped-VMEM limit (fits v7x 64 MiB)


# --------------------------------------------------------------------------- #
# Default path: single HBM->HBM DMA (no grid, no VMEM staging).
# --------------------------------------------------------------------------- #
def _dma_identity_kernel(x_hbm, o_hbm, copy_sem):
    cp = pltpu.make_async_copy(x_hbm, o_hbm, copy_sem)
    cp.start()
    cp.wait()


def _identity_dma(x):
    return pl.pallas_call(
        _dma_identity_kernel,
        out_shape=jax.ShapeDtypeStruct(x.shape, x.dtype),
        in_specs=[pl.BlockSpec(memory_space=pl.ANY)],
        out_specs=pl.BlockSpec(memory_space=pl.ANY),
        scratch_shapes=[pltpu.SemaphoreType.DMA],
    )(x)


# --------------------------------------------------------------------------- #
# Alternative path: tiled, lane-dense, VMEM-pipelined copy.
# --------------------------------------------------------------------------- #
def _identity_kernel(x_ref, o_ref):
    # Pure pass-through on the current tile.
    o_ref[...] = x_ref[...]


def _sublane(dtype):
    """Native sublane granularity: 8 rows for 4B, 16 for 2B, 32 for 1B dtypes."""
    itemsize = jnp.dtype(dtype).itemsize
    return max(_SUBLANE, (_SUBLANE * 4) // max(itemsize, 1))


def _pick_lane_width(n_elems, sublane):
    """Largest multiple of 128 dividing n_elems (capped), preferring >= sublane rows."""
    best = None
    best_tall = None
    lane = _LANE
    while lane <= min(n_elems, _MAX_LANE_WIDTH):
        if n_elems % lane == 0:
            best = lane
            if n_elems // lane >= sublane:
                best_tall = lane
        lane += _LANE
    return best_tall if best_tall is not None else best


def _row_tile(rows, row_bytes, sublane):
    """Row-tile size: ~8 MiB per buffer, multiple of `sublane`, >=4 grid steps."""
    tile_r = max(_TARGET_TILE_BYTES // max(row_bytes, 1), sublane)
    tile_r = (tile_r // sublane) * sublane
    # Keep >= 4 grid steps on arrays big enough to split (v7x has 2 TensorCores).
    if rows >= 4 * sublane:
        cap = ((rows + 3) // 4 + sublane - 1) // sublane * sublane
        tile_r = min(tile_r, max(cap, sublane))
    # Never request more rows than the sublane-rounded row extent.
    tile_r = min(tile_r, (rows + sublane - 1) // sublane * sublane)
    return max(tile_r, sublane)


def _copy_2d(x2d, donate):
    """Tiled identity copy of a (rows, cols) slab; partial final block is masked."""
    rows, cols = x2d.shape
    itemsize = jnp.dtype(x2d.dtype).itemsize
    sublane = _sublane(x2d.dtype)
    tile_r = _row_tile(rows, cols * itemsize, sublane)
    grid = (pl.cdiv(rows, tile_r),)

    return pl.pallas_call(
        _identity_kernel,
        out_shape=jax.ShapeDtypeStruct((rows, cols), x2d.dtype),
        grid=grid,
        in_specs=[pl.BlockSpec((tile_r, cols), lambda i: (i, 0))],
        out_specs=pl.BlockSpec((tile_r, cols), lambda i: (i, 0)),
        input_output_aliases=({0: 0} if donate else {}),
        compiler_params=pltpu.CompilerParams(
            dimension_semantics=("parallel",),
            vmem_limit_bytes=_VMEM_LIMIT_BYTES,
        ),
    )(x2d)


def _identity_tiled(x, donate=False):
    orig_shape = x.shape
    n = x.size
    sublane = _sublane(x.dtype)

    lane = _pick_lane_width(n, sublane)
    if lane is not None:
        # Lane-dense fast path: last dim a large multiple of 128 -> unmasked vst.
        out2d = _copy_2d(x.reshape(n // lane, lane), donate)
        return out2d.reshape(orig_shape)

    # Ragged element count (n % 128 != 0): keep the array's own trailing dim
    # (a full-extent last block dim is always legal) and tile the collapsed
    # leading dims.  No pad / slice / concat: one HBM read + one HBM write.
    if x.ndim >= 2:
        cols = orig_shape[-1]
        out2d = _copy_2d(x.reshape(n // cols, cols), donate)
        return out2d.reshape(orig_shape)

    # 0-D / 1-D ragged inputs: single full-extent block.
    # TODO(synk): chunk very large ragged 1-D inputs instead of one VMEM block
    # (or route them through the HBM->HBM DMA path, which has no such limit).
    out2d = _copy_2d(x.reshape(1, max(n, 1)), donate)
    return out2d.reshape(orig_shape)


# --------------------------------------------------------------------------- #
# Public API
# --------------------------------------------------------------------------- #
def identity_forward(x, *, use_hbm_dma=True, donate=False):
    """Identity forward: returns x unchanged (routed through a Pallas kernel).

    use_hbm_dma=True (default): single direct HBM->HBM DMA (pl.ANY operands).
    use_hbm_dma=False: tiled VMEM-pipelined copy; set donate=True only when the
    caller wraps this in jax.jit and donates x (enables input/output aliasing).
    """
    if x.size == 0:
        return x
    if use_hbm_dma:
        return _identity_dma(x)
    return _identity_tiled(x, donate=donate)


class Identity:
    """JAX/Pallas equivalent of the PyTorch Identity module."""

    def __init__(self, in_channels, *, use_hbm_dma=True, donate=False):
        # Module has no parameters; in_channels is unused (matches PyTorch).
        del in_channels
        self.use_hbm_dma = use_hbm_dma
        self.donate = donate

    def __call__(self, x):
        return identity_forward(
            x, use_hbm_dma=self.use_hbm_dma, donate=self.donate
        )


if __name__ == "__main__":
    key = jax.random.PRNGKey(0)
    k0, k1 = jax.random.split(key)

    # Small NCHW input consistent with a conv-style module: (2, 4, 16, 16).
    x = jax.random.normal(k0, (2, 4, 16, 16), dtype=jnp.float32)

    # Default path: single HBM->HBM DMA.
    module = Identity(in_channels=4)
    y = jax.block_until_ready(module(x))
    assert y.shape == x.shape and y.dtype == x.dtype
    assert bool(jnp.all(y == x))

    # Tiled VMEM-pipelined path (f32, lane-dense slab).
    y2 = jax.block_until_ready(identity_forward(x, use_hbm_dma=False))
    assert y2.shape == x.shape and bool(jnp.all(y2 == x))

    # Tiled path with bf16 (exercises dtype-aware sublane granularity = 16).
    xb = x.astype(jnp.bfloat16)
    yb = jax.block_until_ready(identity_forward(xb, use_hbm_dma=False))
    assert yb.dtype == jnp.bfloat16 and bool(jnp.all(yb == xb))

    # Tiled path with a ragged element count (not a multiple of 128).
    xr = jax.random.normal(k1, (2, 3, 5, 7), dtype=jnp.float32)
    yr = jax.block_until_ready(identity_forward(xr, use_hbm_dma=False))
    assert yr.shape == xr.shape and bool(jnp.all(yr == xr))

    print("KERNEL_OK")
</pallas_src>

<mosaic_0001>
module attributes {stable_mosaic.version = 11 : i64} {
  func.func @_dma_identity_kernel(%arg0: memref<2x4x16x16xf32, #tpu.memory_space<any>>, %arg1: memref<2x4x16x16xf32, #tpu.memory_space<any>>, %arg2: memref<!tpu.dma_semaphore, #tpu.memory_space<semaphore_mem>>) attributes {dimension_semantics = [], scalar_prefetch = 0 : i64, scratch_operands = 1 : i64, tpu.core_type = #tpu.core_type<tc>} {
    tpu.enqueue_dma source(%arg0 : memref<2x4x16x16xf32, #tpu.memory_space<any>>) target(%arg1 : memref<2x4x16x16xf32, #tpu.memory_space<any>>) target_semaphore(%arg2 : memref<!tpu.dma_semaphore, #tpu.memory_space<semaphore_mem>>)
    tpu.wait_dma2 semaphore(%arg2 : memref<!tpu.dma_semaphore, #tpu.memory_space<semaphore_mem>>) src(%arg0 : memref<2x4x16x16xf32, #tpu.memory_space<any>>) dst(%arg1 : memref<2x4x16x16xf32, #tpu.memory_space<any>>)
    return
  }
}

</mosaic_0001>

<bundles_post_ra>
// kernel: tpu_custom_call.1
= control target key start
LH: loop header
LB: loop body
LE: loop exit
PB: predicated region body
PF: predicated region fallthrough
CT: control target
= control target key end

     0   :  { %s34_s12 = smov [#allocation2]   ;;  %s35_s13 = smov [#allocation3]   ;;  %s53_s0 = inlined_call_operand.hbm [shape: f32[2,4,16,16], index: 0, kind: input, shape index: {}]   ;;  %s54_s1 = inlined_call_operand.hbm [shape: f32[2,4,16,16], index: 1, kind: output, shape index: {}]  }
   0x1   :  { %s10_s8 = sshll.u32 %s53_s0, 4  ;;  %s12_s11 = sshll.u32 %s54_s1, 4  ;;  %s11_s8 = int_to_ptr.hbm [resolvable:$true] %s10_s8  ;;  %s13_s11 = int_to_ptr.hbm [resolvable:$true] %s12_s11 }
   0x2   :  { %s36_s14 = smov 0  }
   0x3   :  { %16 = dma.general %s11_s8, 2048, %s13_s11, %s34_s12, %s35_s13, [#allocation4], %s36_s14, 0  }
   0x4   :  { %32 = dma.done.wait [#allocation2], 2048 }
   0x5   :  { %33 = vsyncadd [#allocation2], 4294965248 }
   0x6   :  { %22 = vsyncmov [#allocation2] }
   0x9   :  { %s23_s15 = vpop.sfrf %22 }
   0xa   :  { %p28_p0 = scmp.ne.s32.totalorder %s23_s15, 0 }
   0xc   :  { %27 = shalt.err (%p28_p0)  }

</bundles_post_ra>
